<compile_context>
chip_gen: v7x
topology: tpu7x:2x2x1
jax: 0.10.0
libtpu: 0.0.40
codegen_flags: <defaults>
</compile_context>

<pallas_src>
import jax
import jax.numpy as jnp
from jax import lax
from jax.experimental import pallas as pl
from jax.experimental.pallas import tpu as pltpu

# Deterministic "module init" (loss weights / hyperparams from __init__ args).
MSE_WEIGHT = 1.0       # loss_func_wt['MSE']
CLS_WEIGHT = 0.5       # loss_func_wt['CLS']
CL_WEIGHT = 0.3        # loss_func_wt['CL']
MARGIN = 1.0
TEMPERATURE = 1.0
_PAIRWISE_EPS = 1e-6   # torch F.pairwise_distance default eps (added to the diff)


def _composite_loss_kernel(heads_ref, anchor_ref, bank_ref, out_ref):
    # heads_ref : (4, B) f32  rows = [output1, reg_label1, output_cls, cls_labels]
    # anchor_ref: (B, D) f32  mol1_
    # bank_ref  : (3B, D) f32 [mol1; mol2_; mol2]
    # out_ref   : (4,)  f32 SMEM  [final, mse, cl, cls]
    anchor = anchor_ref[...]
    bank = bank_ref[...]
    B, D = anchor.shape
    NB = 3 * B

    # ---------------- MSE loss (lane-dense (1, B) rows) ----------------
    dmse = heads_ref[0:1, :] - heads_ref[1:2, :]
    mse = jnp.mean(dmse * dmse)

    # ---------------- Contrastive loss (single fused Gram / MXU pass) ----------
    positive = bank[:B, :]                                   # mol1 rows of the bank

    # positive pairwise distance (torch adds eps to the difference)
    pdiff = anchor - positive + _PAIRWISE_EPS
    pos = jnp.sqrt(jnp.sum(pdiff * pdiff, axis=-1, keepdims=True))     # (B, 1)
    pos = pos / TEMPERATURE

    # Gram-identity distances: ||a-n||^2 = ||a||^2 + ||n||^2 - 2 a.n
    a2 = jnp.sum(anchor * anchor, axis=-1, keepdims=True)              # (B, 1)
    ones_row = jnp.ones((1, D), jnp.float32)
    b2 = jnp.einsum('rd,jd->rj', ones_row, bank * bank,
                    preferred_element_type=jnp.float32)                # (1, 3B) lane-dense
    g = jnp.einsum('id,jd->ij', anchor, bank,
                   preferred_element_type=jnp.float32)                 # (B, 3B) on MXU
    d2 = jnp.maximum(a2 + b2 - 2.0 * g, 0.0)     # clamp cancellation negatives
    nd = jnp.sqrt(d2) / TEMPERATURE

    h = jnp.maximum(MARGIN + pos - nd, 0.0)                            # (B, 3B)

    rows = lax.broadcasted_iota(jnp.int32, (B, NB), 0)
    cols = lax.broadcasted_iota(jnp.int32, (B, NB), 1)
    # (col % B) == row, built without a runtime modulo (3 static shifted eqs)
    diag = (cols == rows) | (cols == rows + B) | (cols == rows + 2 * B)
    # mol2_ column block appears twice (identically) in the original 4B bank
    w_col = jnp.where((cols >= B) & (cols < 2 * B), 2.0, 1.0)

    h = jnp.where(diag, 0.0, h) * w_col
    cl = jnp.sum(h) / jnp.float32(B * 4 * B)

    # ---------------- BCE-with-logits loss ----------------
    x = heads_ref[2:3, :]        # logits (1, B)  (== output_cls.squeeze())
    y = heads_ref[3:4, :]        # labels (1, B)
    bce = jnp.maximum(x, 0.0) - x * y + jnp.log1p(jnp.exp(-jnp.abs(x)))
    cls = jnp.mean(bce)

    # ---------------- weighted sum, scalars into SMEM output ----------------
    final = MSE_WEIGHT * mse + CL_WEIGHT * cl + CLS_WEIGHT * cls
    out_ref[0] = final
    out_ref[1] = mse
    out_ref[2] = cl
    out_ref[3] = cls


def composite_loss(output1, reg_label1, mol1, mol1_, mol2, mol2_,
                   output_cls, cls_labels):
    """Returns (final_loss, mse_loss, contrastive_loss, classification_loss)."""
    B, D = mol1.shape

    # Pack the four (B,)/(B,1) heads into one lane-dense (4, B) transfer.
    heads = jnp.stack([output1.reshape(-1), reg_label1.reshape(-1),
                       output_cls.reshape(-1), cls_labels.reshape(-1)],
                      axis=0).astype(jnp.float32)                       # (4, B)
    anchor = mol1_.astype(jnp.float32)                                  # (B, D)
    bank = jnp.concatenate([mol1, mol2_, mol2], axis=0).astype(jnp.float32)  # (3B, D)

    vmem = pl.BlockSpec(memory_space=pltpu.MemorySpace.VMEM)
    smem = pl.BlockSpec(memory_space=pltpu.MemorySpace.SMEM)

    nb = 3 * B
    cost = pl.CostEstimate(
        flops=2 * B * nb * D + 2 * nb * D + 2 * B * D + 10 * B * nb + 20 * B,
        transcendentals=B * nb + 2 * B,
        bytes_accessed=(heads.size + anchor.size + bank.size) * 4 + 16,
    )

    # NOTE(production sizing): for large B/D add a grid — "parallel" over anchor
    # row tiles (lets v7x's 2 TensorCores split the work) and "arbitrary" over
    # negative-bank tiles with an f32 hinge-sum accumulator in VMEM scratch and
    # pl.when init/finalize.  Pick bank (lane) tiles that are multiples of 256
    # on v6e/v7x (128 on v5e), block D in 256 multiples, and size the per-step
    # tiles so (anchor + bank + norms) x 2 pipeline buffers stays under ~32 MiB
    # scoped VMEM (v7x's physical VMEM is 64 MiB — roughly half the tile you
    # would pick for v5e/v6e's 128 MiB).  bf16 MXU operands halve DMA bytes
    # there; keep all elementwise/sqrt/exp math in f32 (v5e has no bf16 VPU/EUP).
    out = pl.pallas_call(
        _composite_loss_kernel,
        out_shape=jax.ShapeDtypeStruct((4,), jnp.float32),
        in_specs=[vmem, vmem, vmem],
        out_specs=smem,
        cost_estimate=cost,
    )(heads, anchor, bank)

    return out[0], out[1], out[2], out[3]


if __name__ == "__main__":
    key = jax.random.PRNGKey(0)
    B, D = 8, 32
    ks = jax.random.split(key, 8)

    mol1 = jax.random.normal(ks[0], (B, D), jnp.float32)     # query[0]
    mol1_ = jax.random.normal(ks[1], (B, D), jnp.float32)    # query[1]
    mol2 = jax.random.normal(ks[2], (B, D), jnp.float32)     # support[0]
    mol2_ = jax.random.normal(ks[3], (B, D), jnp.float32)    # support[1]

    output1 = jax.random.normal(ks[4], (B, 1), jnp.float32)      # regression head
    reg_label1 = jax.random.normal(ks[5], (B, 1), jnp.float32)   # regression labels
    output_cls = jax.random.normal(ks[6], (B, 1), jnp.float32)   # cls logits
    cls_labels = (jax.random.uniform(ks[7], (B,)) > 0.5).astype(jnp.float32)

    final_loss, mse_loss, cl_loss, cls_loss = composite_loss(
        output1, reg_label1, mol1, mol1_, mol2, mol2_, output_cls, cls_labels)
    jax.block_until_ready(final_loss)

    # pure-JAX reference of the original (concat + modulo-mask) semantics
    def _ref():
        mse = jnp.mean((output1 - reg_label1) ** 2)
        negs = jnp.concatenate([mol1, mol2_, mol2, mol2_], axis=0)
        pos = jnp.sqrt(jnp.sum((mol1_ - mol1 + _PAIRWISE_EPS) ** 2, -1)) / TEMPERATURE
        neg = jnp.sqrt(jnp.sum((mol1_[:, None, :] - negs[None]) ** 2, -1)) / TEMPERATURE
        l = jnp.maximum(MARGIN + pos[:, None] - neg, 0.0)
        jj = jnp.arange(negs.shape[0])[None, :] % B
        l = jnp.where(jj == jnp.arange(B)[:, None], 0.0, l)
        cl = jnp.mean(l)
        x, y = output_cls.reshape(-1), cls_labels
        cls = jnp.mean(jnp.maximum(x, 0) - x * y + jnp.log1p(jnp.exp(-jnp.abs(x))))
        final = MSE_WEIGHT * mse + CL_WEIGHT * cl + CLS_WEIGHT * cls
        return final, mse, cl, cls

    ref_final, ref_mse, ref_cl, ref_cls = _ref()
    assert jnp.allclose(final_loss, ref_final, rtol=1e-4, atol=1e-4)
    assert jnp.allclose(mse_loss, ref_mse, rtol=1e-4, atol=1e-4)
    assert jnp.allclose(cl_loss, ref_cl, rtol=1e-4, atol=1e-4)
    assert jnp.allclose(cls_loss, ref_cls, rtol=1e-4, atol=1e-4)
    print("KERNEL_OK")
</pallas_src>

<mosaic_0001>
module attributes {stable_mosaic.version = 11 : i64} {
  func.func @_composite_loss_kernel(%arg0: memref<4x8xf32, #tpu.memory_space<vmem>>, %arg1: memref<8x32xf32, #tpu.memory_space<vmem>>, %arg2: memref<24x32xf32, #tpu.memory_space<vmem>>, %arg3: memref<4xf32, #tpu.memory_space<smem>>) attributes {dimension_semantics = [], scalar_prefetch = 0 : i64, scratch_operands = 0 : i64, tpu.core_type = #tpu.core_type<tc>} {
    %c0 = arith.constant 0 : index
    %c0_0 = arith.constant 0 : index
    %0 = vector.load %arg1[%c0, %c0_0] : memref<8x32xf32, #tpu.memory_space<vmem>>, vector<8x32xf32>
    %c0_1 = arith.constant 0 : index
    %c0_2 = arith.constant 0 : index
    %1 = vector.load %arg2[%c0_1, %c0_2] : memref<24x32xf32, #tpu.memory_space<vmem>>, vector<24x32xf32>
    %c0_3 = arith.constant 0 : index
    %c0_4 = arith.constant 0 : index
    %2 = vector.load %arg0[%c0_3, %c0_4] : memref<4x8xf32, #tpu.memory_space<vmem>>, vector<1x8xf32>
    %c1 = arith.constant 1 : index
    %c0_5 = arith.constant 0 : index
    %3 = vector.load %arg0[%c1, %c0_5] : memref<4x8xf32, #tpu.memory_space<vmem>>, vector<1x8xf32>
    %4 = arith.subf %2, %3 : vector<1x8xf32>
    %5 = arith.mulf %4, %4 : vector<1x8xf32>
    %6 = vector.shape_cast %5 : vector<1x8xf32> to vector<1x1x8xf32>
    %cst = arith.constant dense<0.000000e+00> : vector<1xf32>
    %7 = vector.multi_reduction <add>, %6, %cst [1, 2] : vector<1x1x8xf32> to vector<1xf32>
    %8 = vector.shape_cast %7 : vector<1xf32> to vector<1x1x1xf32>
    %9 = vector.extract %8[0, 0, 0] : f32 from vector<1x1x1xf32>
    %cst_6 = arith.constant 8.000000e+00 : f32
    %10 = arith.divf %9, %cst_6 : f32
    %11 = vector.extract_strided_slice %1 {offsets = [0, 0], sizes = [8, 32], strides = [1, 1]} : vector<24x32xf32> to vector<8x32xf32>
    %12 = arith.subf %0, %11 : vector<8x32xf32>
    %cst_7 = arith.constant 9.99999997E-7 : f32
    %13 = vector.broadcast %cst_7 : f32 to vector<8x32xf32>
    %14 = arith.addf %12, %13 : vector<8x32xf32>
    %15 = arith.mulf %14, %14 : vector<8x32xf32>
    %cst_8 = arith.constant dense<0.000000e+00> : vector<8xf32>
    %16 = vector.multi_reduction <add>, %15, %cst_8 [1] : vector<8x32xf32> to vector<8xf32>
    %17 = vector.shape_cast %16 : vector<8xf32> to vector<8x1xf32>
    %18 = math.sqrt %17 : vector<8x1xf32>
    %cst_9 = arith.constant 1.000000e+00 : f32
    %19 = vector.broadcast %cst_9 : f32 to vector<8x1xf32>
    %20 = arith.divf %18, %19 : vector<8x1xf32>
    %21 = arith.mulf %0, %0 : vector<8x32xf32>
    %cst_10 = arith.constant dense<0.000000e+00> : vector<8xf32>
    %22 = vector.multi_reduction <add>, %21, %cst_10 [1] : vector<8x32xf32> to vector<8xf32>
    %23 = vector.shape_cast %22 : vector<8xf32> to vector<8x1xf32>
    %cst_11 = arith.constant 1.000000e+00 : f32
    %24 = vector.broadcast %cst_11 : f32 to vector<1x32xf32>
    %25 = arith.mulf %1, %1 : vector<24x32xf32>
    "tpu.trace_start"() <{level = 10 : i32, message = "rd,jd->rj"}> : () -> ()
    %cst_12 = arith.constant dense<0.000000e+00> : vector<1x24xf32>
    %26 = tpu.matmul %24, %25, %cst_12 {dimension_numbers = #tpu.dot_dimension_numbers<[1], [1], [0], [0], [0, 0, 1, 0], [], []>} : vector<1x32xf32>, vector<24x32xf32>, vector<1x24xf32> -> vector<1x24xf32>
    "tpu.trace_stop"() : () -> ()
    "tpu.trace_start"() <{level = 10 : i32, message = "id,jd->ij"}> : () -> ()
    %cst_13 = arith.constant dense<0.000000e+00> : vector<8x24xf32>
    %27 = tpu.matmul %0, %1, %cst_13 {dimension_numbers = #tpu.dot_dimension_numbers<[1], [1], [0], [0], [0, 0, 1, 0], [], []>} : vector<8x32xf32>, vector<24x32xf32>, vector<8x24xf32> -> vector<8x24xf32>
    "tpu.trace_stop"() : () -> ()
    %28 = vector.broadcast %23 : vector<8x1xf32> to vector<8x24xf32>
    %29 = vector.broadcast %26 : vector<1x24xf32> to vector<8x24xf32>
    %30 = arith.addf %28, %29 : vector<8x24xf32>
    %cst_14 = arith.constant 2.000000e+00 : f32
    %31 = vector.broadcast %cst_14 : f32 to vector<8x24xf32>
    %32 = arith.mulf %31, %27 : vector<8x24xf32>
    %33 = arith.subf %30, %32 : vector<8x24xf32>
    %cst_15 = arith.constant 0.000000e+00 : f32
    %34 = vector.broadcast %cst_15 : f32 to vector<8x24xf32>
    %35 = arith.maximumf %33, %34 : vector<8x24xf32>
    %36 = math.sqrt %35 : vector<8x24xf32>
    %cst_16 = arith.constant 1.000000e+00 : f32
    %37 = vector.broadcast %cst_16 : f32 to vector<8x24xf32>
    %38 = arith.divf %36, %37 : vector<8x24xf32>
    %cst_17 = arith.constant 1.000000e+00 : f32
    %39 = vector.broadcast %cst_17 : f32 to vector<8x1xf32>
    %40 = arith.addf %39, %20 : vector<8x1xf32>
    %41 = vector.broadcast %40 : vector<8x1xf32> to vector<8x24xf32>
    %42 = arith.subf %41, %38 : vector<8x24xf32>
    %cst_18 = arith.constant 0.000000e+00 : f32
    %43 = vector.broadcast %cst_18 : f32 to vector<8x24xf32>
    %44 = arith.maximumf %42, %43 : vector<8x24xf32>
    %45 = tpu.iota {dimensions = array<i32: 0>} : vector<8x24xi32>
    %46 = tpu.iota {dimensions = array<i32: 1>} : vector<8x24xi32>
    %47 = arith.cmpi eq, %46, %45 : vector<8x24xi32>
    %c8_i32 = arith.constant 8 : i32
    %48 = vector.broadcast %c8_i32 : i32 to vector<8x24xi32>
    %49 = arith.addi %45, %48 : vector<8x24xi32>
    %50 = arith.cmpi eq, %46, %49 : vector<8x24xi32>
    %51 = arith.ori %47, %50 : vector<8x24xi1>
    %c16_i32 = arith.constant 16 : i32
    %52 = vector.broadcast %c16_i32 : i32 to vector<8x24xi32>
    %53 = arith.addi %45, %52 : vector<8x24xi32>
    %54 = arith.cmpi eq, %46, %53 : vector<8x24xi32>
    %55 = arith.ori %51, %54 : vector<8x24xi1>
    %c8_i32_19 = arith.constant 8 : i32
    %56 = vector.broadcast %c8_i32_19 : i32 to vector<8x24xi32>
    %57 = arith.cmpi sge, %46, %56 : vector<8x24xi32>
    %c16_i32_20 = arith.constant 16 : i32
    %58 = vector.broadcast %c16_i32_20 : i32 to vector<8x24xi32>
    %59 = arith.cmpi slt, %46, %58 : vector<8x24xi32>
    %60 = arith.andi %57, %59 : vector<8x24xi1>
    %cst_21 = arith.constant 2.000000e+00 : f32
    %cst_22 = arith.constant 1.000000e+00 : f32
    %61 = vector.broadcast %cst_21 : f32 to vector<8x24xf32>
    %62 = vector.broadcast %cst_22 : f32 to vector<8x24xf32>
    %63 = arith.select %60, %61, %62 : vector<8x24xi1>, vector<8x24xf32>
    %cst_23 = arith.constant 0.000000e+00 : f32
    %64 = vector.broadcast %cst_23 : f32 to vector<8x24xf32>
    %65 = arith.select %55, %64, %44 : vector<8x24xi1>, vector<8x24xf32>
    %66 = arith.mulf %65, %63 : vector<8x24xf32>
    %67 = vector.shape_cast %66 : vector<8x24xf32> to vector<1x8x24xf32>
    %cst_24 = arith.constant dense<0.000000e+00> : vector<1xf32>
    %68 = vector.multi_reduction <add>, %67, %cst_24 [1, 2] : vector<1x8x24xf32> to vector<1xf32>
    %69 = vector.shape_cast %68 : vector<1xf32> to vector<1x1x1xf32>
    %70 = vector.extract %69[0, 0, 0] : f32 from vector<1x1x1xf32>
    %cst_25 = arith.constant 2.560000e+02 : f32
    %71 = arith.divf %70, %cst_25 : f32
    %c2 = arith.constant 2 : index
    %c0_26 = arith.constant 0 : index
    %72 = vector.load %arg0[%c2, %c0_26] : memref<4x8xf32, #tpu.memory_space<vmem>>, vector<1x8xf32>
    %c3 = arith.constant 3 : index
    %c0_27 = arith.constant 0 : index
    %73 = vector.load %arg0[%c3, %c0_27] : memref<4x8xf32, #tpu.memory_space<vmem>>, vector<1x8xf32>
    %cst_28 = arith.constant 0.000000e+00 : f32
    %74 = vector.broadcast %cst_28 : f32 to vector<1x8xf32>
    %75 = arith.maximumf %72, %74 : vector<1x8xf32>
    %76 = arith.mulf %72, %73 : vector<1x8xf32>
    %77 = arith.subf %75, %76 : vector<1x8xf32>
    %78 = math.absf %72 : vector<1x8xf32>
    %cst_29 = arith.constant 0.000000e+00 : f32
    %79 = vector.broadcast %cst_29 : f32 to vector<1x8xf32>
    %80 = arith.subf %79, %78 : vector<1x8xf32>
    %81 = math.exp %80 : vector<1x8xf32>
    %82 = math.log1p %81 : vector<1x8xf32>
    %83 = arith.addf %77, %82 : vector<1x8xf32>
    %84 = vector.shape_cast %83 : vector<1x8xf32> to vector<1x1x8xf32>
    %cst_30 = arith.constant dense<0.000000e+00> : vector<1xf32>
    %85 = vector.multi_reduction <add>, %84, %cst_30 [1, 2] : vector<1x1x8xf32> to vector<1xf32>
    %86 = vector.shape_cast %85 : vector<1xf32> to vector<1x1x1xf32>
    %87 = vector.extract %86[0, 0, 0] : f32 from vector<1x1x1xf32>
    %cst_31 = arith.constant 8.000000e+00 : f32
    %88 = arith.divf %87, %cst_31 : f32
    %cst_32 = arith.constant 1.000000e+00 : f32
    %89 = arith.mulf %cst_32, %10 : f32
    %cst_33 = arith.constant 3.000000e-01 : f32
    %90 = arith.mulf %cst_33, %71 : f32
    %91 = arith.addf %89, %90 : f32
    %cst_34 = arith.constant 5.000000e-01 : f32
    %92 = arith.mulf %cst_34, %88 : f32
    %93 = arith.addf %91, %92 : f32
    %c0_35 = arith.constant 0 : index
    %94 = memref.load %arg3[%c0_35] : memref<4xf32, #tpu.memory_space<smem>>
    memref.store %93, %arg3[%c0_35] : memref<4xf32, #tpu.memory_space<smem>>
    %c1_36 = arith.constant 1 : index
    %95 = memref.load %arg3[%c1_36] : memref<4xf32, #tpu.memory_space<smem>>
    memref.store %10, %arg3[%c1_36] : memref<4xf32, #tpu.memory_space<smem>>
    %c2_37 = arith.constant 2 : index
    %96 = memref.load %arg3[%c2_37] : memref<4xf32, #tpu.memory_space<smem>>
    memref.store %71, %arg3[%c2_37] : memref<4xf32, #tpu.memory_space<smem>>
    %c3_38 = arith.constant 3 : index
    %97 = memref.load %arg3[%c3_38] : memref<4xf32, #tpu.memory_space<smem>>
    memref.store %88, %arg3[%c3_38] : memref<4xf32, #tpu.memory_space<smem>>
    return
  }
}

</mosaic_0001>

<bundles_post_ra>
// kernel: tpu_custom_call.1
= control target key start
LH: loop header
LB: loop body
LE: loop exit
PB: predicated region body
PF: predicated region fallthrough
CT: control target
= control target key end

     0   :  { %8 = vsyncpa [#allocation3], 0  ;;  %s605_s0 = inlined_call_operand.hbm [shape: f32[4,8], index: 0, kind: input, shape index: {}]   ;;  %s606_s1 = inlined_call_operand.hbm [shape: f32[8,32], index: 1, kind: input, shape index: {}]   ;;  %s607_s2 = inlined_call_operand.hbm [shape: f32[24,32], index: 2, kind: input, shape index: {}]   ;;  %s608_s3 = inlined_call_operand.hbm [shape: f32[4], index: 3, kind: output, shape index: {}]  }
   0x1   :  { %9 = vsyncpa [#allocation6], 0 }
   0x2   :  { %10 = vsyncpa [#allocation4], 0  ;;  %s515_s12 = smov [#allocation5]   ;;  %s516_s14 = smov [#allocation2]  }
   0x3   :  { %s27_s13 = sshll.u32 %s515_s12, 4  ;;  %s17_s15 = sshll.u32 %s516_s14, 4  ;;  %s28_s13 = int_to_ptr.vmem [resolvable:$true] %s27_s13  ;;  %s18_s15 = int_to_ptr.vmem [resolvable:$true] %s17_s15 }
   0x4   :  { %s433_s18 = scalar_lea.hbm %s606_s1, 128 }
   0x5   :  { %p434_p0 = scmp.ne.s32.totalorder %s606_s1, %s433_s18  ;;  %p437_p1 = scmp.lt.u32.totalorder %s433_s18, %s606_s1 }
   0x7   :  { %p439_p2 = pnand %p437_p1, %p434_p0 }
   0x9   :  { %442 = shalt.err (!%p439_p2)
}
   0xa   :  { %s443_s23 = scalar_lea.vmem %s28_s13, 128  ;;  %p448_p4 = scmp.lt.s32.totalorder %s28_s13, %s28_s13 }
   0xb   :  { %p444_p3 = scmp.ne.s32.totalorder %s28_s13, %s443_s23  ;;  %p449_p5 = scmp.lt.s32.totalorder %s443_s23, %s443_s23 }
   0xd   :  { %p450_p6 = por %p449_p5, %p448_p4 }
   0xf   :  { %p451_p7 = pnand %p450_p6, %p444_p3 }
  0x11   :  { %454 = shalt.err (!%p451_p7)
}
  0x12   :  { %30 = dma.hbm_to_vmem [thread:$0]  %s606_s1, 128, %s28_s13, [#allocation6]  }
  0x13   :  { %s455_s28 = scalar_lea.hbm %s605_s0, 64 }
  0x14   :  { %p456_p8 = scmp.ne.s32.totalorder %s605_s0, %s455_s28  ;;  %p459_p9 = scmp.lt.u32.totalorder %s455_s28, %s605_s0 }
  0x16   :  { %p461_p10 = pnand %p459_p9, %p456_p8 }
  0x18   :  { %464 = shalt.err (!%p461_p10)
}
  0x19   :  { %s465_s6 = scalar_lea.vmem %s18_s15, 64  ;;  %p470_p12 = scmp.lt.s32.totalorder %s18_s15, %s18_s15 }
  0x1a   :  { %p466_p11 = scmp.ne.s32.totalorder %s18_s15, %s465_s6  ;;  %p471_p13 = scmp.lt.s32.totalorder %s465_s6, %s465_s6 }
  0x1c   :  { %p472_p0 = por %p471_p13, %p470_p12 }
  0x1e   :  { %p473_p1 = pnand %p472_p0, %p466_p11 }
  0x20   :  { %476 = shalt.err (!%p473_p1)
}
  0x21   :  { %20 = dma.hbm_to_vmem [thread:$0]  %s605_s0, 64, %s18_s15, [#allocation3]  }
  0x22   :  { %s517_s8 = smov [#allocation7]   ;;  %s477_s12 = scalar_lea.hbm %s607_s2, 384 }
  0x23   :  { %s36_s9 = sshll.u32 %s517_s8, 4  ;;  %p478_p2 = scmp.ne.s32.totalorder %s607_s2, %s477_s12  ;;  %s37_s9 = int_to_ptr.vmem [resolvable:$true] %s36_s9 }
  0x24   :  { %p481_p3 = scmp.lt.u32.totalorder %s477_s12, %s607_s2 }
  0x26   :  { %p483_p4 = pnand %p481_p3, %p478_p2 }
  0x28   :  { %486 = shalt.err (!%p483_p4)
}
  0x29   :  { %s487_s18 = scalar_lea.vmem %s37_s9, 384  ;;  %p492_p6 = scmp.lt.s32.totalorder %s37_s9, %s37_s9 }
  0x2a   :  { %p488_p5 = scmp.ne.s32.totalorder %s37_s9, %s487_s18  ;;  %p493_p7 = scmp.lt.s32.totalorder %s487_s18, %s487_s18 }
  0x2c   :  { %p494_p8 = por %p493_p7, %p492_p6 }
  0x2e   :  { %p495_p9 = pnand %p494_p8, %p488_p5 }
  0x30   :  { %498 = shalt.err (!%p495_p9)
}
  0x31   :  { %s518_s0 = smov 128   ;;  %s519_s15 = smov 8  }
  0x32   :  { %42 = dma.hbm_to_vmem [thread:$0]  %s607_s2, 384, %s37_s9, [#allocation6], %s518_s0, %s518_s0, %s519_s15  }
  0x33   :  { %509 = dma.done.wait [#allocation3], 64  }
  0x34   :  { %510 = vsyncadd [#allocation3], 4294967232 }
  0x35   :  { %511 = dma.done.wait [#allocation6], 512  }
  0x36   :  { %512 = vsyncadd [#allocation6], 4294966784  ;;  %v520_v0 = vmov 0.0|0.0   ;;  %vm521_vm0 = vmmov 0   ;;  %v522_v1 = vmov 0.0   ;;  %vm77_vm1 = vcmask 261120  }
  0x37   :  { %401 = vmatprep.subr.bf16.mxu0 %v520_v0  ;;  %405 = vmatprep.subr.bf16.mxu1 %v520_v0  ;;  %v53_v2 = vld [vmem:[#allocation7] sm:$0xff]  ;;  %v54_v3 = vld [vmem:[#allocation7 + $0x8] sm:$0xff]  ;;  %vm403_vm2 = vmpackc.low %vm77_vm1, %vm77_vm1  ;;  %v523_v17 = vmov 1.0   ;;  %vm60_vm3 = vcmask 57344   ;;  %v259_v42 = vlaneseq  ;;  %s499_s5 = scalar_lea.hbm %s608_s3, 16 }
  0x38   :  { %389 = vmatprep.mubr.msk.f32.mxu0 %vm521_vm0, %v522_v1  ;;  %398 = vmatprep.mubr.msk.f32.mxu1 %vm521_vm0, %v522_v1  ;;  %v92_v4 = vmul.f32 %v53_v2, %v53_v2  ;;  %v93_v5 = vmul.f32 %v54_v3, %v54_v3  ;;  %v406_v6 = vpack.c.bf16 %v54_v3, %v53_v2  ;;  %v52_v7 = vld [vmem:[#allocation5] sm:$0xff]  ;;  %v55_v13 = vld [vmem:[#allocation7 + $0x10] sm:$0xff]  ;;  %p500_p10 = scmp.ne.s32.totalorder %s608_s3, %s499_s5  ;;  %p503_p11 = scmp.lt.u32.totalorder %s499_s5, %s608_s3 }
  0x39   :  { %v88_v8 = vmul.f32 %v52_v7, %v52_v7  ;;  %v74_v9 = vsub.f32 %v52_v7, %v53_v2  ;;  %v94_v16 = vmul.f32 %v55_v13, %v55_v13  ;;  %v308_v18 = vld [vmem:[#allocation2 + $0x2] sm:$0x1]  ;;  %v56_v23 = vld [vmem:[#allocation2] sm:$0x1]  ;;  %v57_v24 = vld [vmem:[#allocation2 + $0x1] sm:$0x1] }
  0x3a   :  { %v402_v10 = vpack.c.bf16 %v93_v5, %v92_v4  ;;  %408 = vmatpush3.bf16.xpose.msk.msra.mxu1 %vm403_vm2, %v406_v6  ;;  %v313_v19 = vand.u32 2147483647, %v308_v18  ;;  %v58_v25 = vsub.f32 %v56_v23, %v57_v24  ;;  %v309_v30 = vld [vmem:[#allocation2 + $0x3] sm:$0x1]  ;;  %v310_v32 = vmax.f32 %v308_v18, 0.0  ;;  %p505_p12 = pnand %p503_p11, %p500_p10 }
  0x3b   :  { %396 = vmatprep.subr.mxu1 %v522_v1  ;;  %v89_v11 = vsel %vm77_vm1, %v88_v8, 0.0  ;;  %v75_v12 = vadd.f32 1e-06, %v74_v9  ;;  %v311_v33 = vmul.f32 %v309_v30, %v308_v18  ;;  %v260_v44 = vshrl.u32 %v259_v42, 7 }
  0x3c   :  { %404 = vmatpush3.bf16.xpose.msk.msra.mxu0 %vm403_vm2, %v402_v10  ;;  %90 = vadd.xlane.f32.xlu0 %v89_v11  ;;  %v314_v20 = vsub.f32 0.0, %v313_v19  ;;  %v59_v27 = vmul.f32 %v58_v25, %v58_v25  ;;  %v280_v59 = vand.u32 127, %v259_v42 }
  0x3d   :  { %387 = vmatprep.subr.mxu0 %v522_v1  ;;  %v76_v14 = vmul.f32 %v75_v12, %v75_v12  ;;  %v312_v37 = vsub.f32 %v310_v32, %v311_v33  ;;  %v261_v46 = vsub.s32 0, %v260_v44  ;;  %v282_v60 = vadd.s32 8, %v260_v44 }
  0x3e   :  { %v315_v21 = vmul.f32 1.442695, %v314_v20  ;;  %v61_v29 = vsel %vm60_vm3, %v59_v27, 0.0  ;;  %v285_v62 = vadd.s32 16, %v260_v44  ;;  %vm281_vm7 = vcmp.eq.s32.totalorder %v280_v59, %v260_v44 }
  0x3f   :  { %v78_v15 = vsel %vm77_vm1, %v76_v14, 0.0  ;;  %62 = vadd.xlane.f32.xlu1 %v61_v29  ;;  %vm283_vm8 = vcmp.eq.s32.totalorder %v280_v59, %v282_v60  ;;  %vm288_vm9 = vcmp.ge.s32.totalorder %v280_v59, 8  ;;  %vm289_vm10 = vcmp.lt.s32.totalorder %v280_v59, 16 }
  0x40   :  { %79 = vadd.xlane.f32.xlu0 %v78_v15  ;;  %425 = vpow2.f32 %v315_v21  ;;  %vm284_vm13 = vmor %vm281_vm7, %vm283_vm8  ;;  %vm286_vm14 = vcmp.eq.s32.totalorder %v280_v59, %v285_v62 }
  0x41   :  { %vm290_vm15 = vmand %vm288_vm9, %vm289_vm10 }
  0x42   :  { %397 = vmatpush3.xpose.msk.msra.mxu1 %vm77_vm1, %v55_v13  ;;  %vm287_vm0 = vmor %vm284_vm13, %vm286_vm14  ;;  %v291_v8 = vsel %vm290_vm15, 2.0, %v523_v17 }
  0x44   :  { %388 = vmatpush3.xpose.msk.msra.mxu0 %vm77_vm1, %v94_v16 }
  0x45   :  { %399 = vmatmul.mubr.msk.f32.vlgmr.msra.gmra.mrb[0].mxu1 %vm77_vm1, %v52_v7 }
  0x47   :  { %390 = vmatmul.mubr.msk.f32.vlgmr.msra.gmra.mrb[0].mxu0 %vm77_vm1, %v523_v17  ;;  %vm294_vm1 = vcmask 195584  }
  0x4a   :  { %v426_v22 = vpop.eup %425 }
  0x4b   :  { %v317_v26 = vadd.f32 1.0, %v426_v22  ;;  %v320_v28 = vmul.f32 -0.5, %v426_v22  ;;  %v323_v34 = vand.u32 2147483647, %v426_v22 }
  0x4d   :  { %427 = vlog2.f32 %v317_v26  ;;  %v321_v31 = vadd.f32 1.0, %v320_v28  ;;  %vm324_vm4 = vcmp.lt.f32.partialorder %v323_v34, 0.0004427343 }
  0x4f   :  { %v322_v35 = vmul.f32 %v426_v22, %v321_v31 }
  0x57   :  { %v428_v36 = vpop.eup %427 }
  0x58   :  { %v319_v38 = vmul.f32 0.6931472, %v428_v36 }
  0x5a   :  { %v325_v39 = vsel %vm324_vm4, %v322_v35, %v319_v38 }
  0x5b   :  { %v326_v40 = vadd.f32 %v325_v39, %v312_v37 }
  0x5d   :  { %v327_v41 = vsel %vm60_vm3, %v326_v40, 0.0 }
  0x5e   :  { %328 = vadd.xlane.f32.xlu0 %v327_v41 }
  0xc9   :  { %v91_v43 = vpop.xlane.xlu0 %90 }
  0xcc   :  { %v63_v10 = vpop.xlane.xlu1 %62 }
  0xcd   :  { %v80_v45 = vpop.xlane.xlu0 %79  ;;  %v64_v12 = vrot.slane %v63_v10, 4 }
  0xce   :  { %429 = vrsqrt.f32 %v80_v45  ;;  %vm83_vm5 = vcmp.eq.f32.partialorder %v80_v45, inf  ;;  %v86_v58 = vand.u32 2147483648, %v80_v45  ;;  %vm85_vm6 = vcmp.eq.f32.partialorder %v80_v45, 0.0 }
  0xcf   :  { %v65_v14 = vadd.f32 %v64_v12, %v63_v10 }
  0xd1   :  { %v66_v15 = vrot.slane %v65_v14, 2 }
  0xd3   :  { %v67_v16 = vadd.f32 %v66_v15, %v65_v14 }
  0xd5   :  { %v68_v18 = vrot.slane %v67_v16, 1 }
  0xd7   :  { %v69_v19 = vadd.f32 %v68_v18, %v67_v16 }
  0xd8   :  { %v430_v56 = vpop.eup %429 }
  0xd9   :  { %v82_v57 = vmul.f32 %v430_v56, %v80_v45  ;;  %409 = vpush %v69_v19 }
  0xdb   :  { %v84_v61 = vsel %vm83_vm5, %v80_v45, %v82_v57 }
  0xdc   :  { %v87_v0 = vsel %vm85_vm6, %v86_v58, %v84_v61 }
  0xdd   :  { %v274_v4 = vadd.f32 1.0, %v87_v0 }
  0xeb   :  { %v329_v20 = vpop.xlane.xlu0 %328 }
  0xec   :  { %v330_v21 = vrot.slane %v329_v20, 4 }
  0xee   :  { %v331_v22 = vadd.f32 %v330_v21, %v329_v20 }
  0xf0   :  { %v332_v17 = vrot.slane %v331_v22, 2 }
  0xf2   :  { %v333_v26 = vadd.f32 %v332_v17, %v331_v22 }
  0xf4   :  { %v334_v29 = vrot.slane %v333_v26, 1 }
  0xf6   :  { %v335_v32 = vadd.f32 %v334_v29, %v333_v26 }
 0x10a   :  { %s410_s2 = spop %409 }
 0x10b   :  { %s73_s21 = smul.f32 0.125, %s410_s2 }
 0x10d   :  { %347 = sst [smem:[#allocation8 + $0x1]] %s73_s21 }
 0x118   :  { %v255_v47 = vpop.f32.mrb[0].mxu1 }
 0x119   :  { %v400_v48 = vpop.f32.mrb[1].mxu1  ;;  %v264_v52 = vmul.f32 2.0, %v255_v47 }
 0x11a   :  { %v173_v49 = vpop.f32.mrb[0].mxu0 }
 0x11b   :  { %v262_v50 = vrot.slane %v173_v49, %v261_v46  ;;  %v391_v51 = vpop.f32.mrb[1].mxu0 }
 0x11d   :  { %v263_v53 = vadd.f32 %v262_v50, %v91_v43 }
 0x11f   :  { %v265_v54 = vsub.f32 %v263_v53, %v264_v52 }
 0x121   :  { %v266_v55 = vmax.f32 %v265_v54, 0.0 }
 0x123   :  { %431 = vrsqrt.f32 %v266_v55  ;;  %vm269_vm11 = vcmp.eq.f32.partialorder %v266_v55, inf  ;;  %v272_v2 = vand.u32 2147483648, %v266_v55  ;;  %vm271_vm12 = vcmp.eq.f32.partialorder %v266_v55, 0.0 }
 0x12d   :  { %v432_v63 = vpop.eup %431 }
 0x12e   :  { %v268_v1 = vmul.f32 %v432_v63, %v266_v55 }
 0x130   :  { %v270_v3 = vsel %vm269_vm11, %v266_v55, %v268_v1 }
 0x131   :  { %v273_v5 = vsel %vm271_vm12, %v272_v2, %v270_v3 }
 0x132   :  { %v275_v6 = vsub.f32 %v274_v4, %v273_v5 }
 0x134   :  { %v276_v7 = vmax.f32 %v275_v6, 0.0 }
 0x136   :  { %v292_v9 = vsel %vm287_vm0, 0.0, %v276_v7 }
 0x137   :  { %v293_v11 = vmul.f32 %v292_v9, %v291_v8 }
 0x139   :  { %v295_v13 = vsel %vm294_vm1, %v293_v11, 0.0 }
 0x13a   :  { %296 = vadd.xlane.f32.xlu1 %v295_v13 }
 0x1c7   :  { %v297_v23 = vpop.xlane.xlu1 %296 }
 0x1c8   :  { %v298_v24 = vrot.slane %v297_v23, 4 }
 0x1ca   :  { %v299_v25 = vadd.f32 %v298_v24, %v297_v23 }
 0x1cc   :  { %v300_v27 = vrot.slane %v299_v25, 2 }
 0x1ce   :  { %v301_v28 = vadd.f32 %v300_v27, %v299_v25 }
 0x1d0   :  { %v302_v30 = vrot.slane %v301_v28, 1 }
 0x1d2   :  { %v303_v31 = vadd.f32 %v302_v30, %v301_v28 }
 0x1d4   :  { %411 = vpush %v303_v31 }
 0x1d5   :  { %413 = vpush %v335_v32 }
 0x205   :  { %s412_s22 = spop %411 }
 0x206   :  { %s307_s23 = smul.f32 0.00390625, %s412_s22  ;;  %s414_s24 = spop %413 }
 0x207   :  { %s339_s25 = smul.f32 0.125, %s414_s24 }
 0x208   :  { %s340_s26 = smul.f32 0.3, %s307_s23  ;;  %349 = sst [smem:[#allocation8 + $0x2]] %s307_s23 }
 0x209   :  { %351 = sst [smem:[#allocation8 + $0x3]] %s339_s25  ;;  %s342_s28 = smul.f32 0.5, %s339_s25 }
 0x20a   :  { %s341_s27 = sadd.f32 %s340_s26, %s73_s21 }
 0x20c   :  { %s343_s29 = sadd.f32 %s342_s28, %s341_s27 }
 0x20e   :  { %345 = sst [smem:[#allocation8]] %s343_s29 }
 0x20f   :  { %508 = shalt.err (!%p505_p12)
}
 0x210   :  { %s524_s9 = smov [#allocation8]  }
 0x211   :  { %359 = dma.smem_to_hbm %s524_s9, 16, %s608_s3, [#allocation4]  }
 0x212   :  { %513 = dma.done.wait [#allocation4], 16  }
 0x213   :  { %514 = vsyncadd [#allocation4], 4294967280 }
 0x214   :  { %363 = sfence }
 0x215   :  { %364 = vsyncpa [#allocation3], 1 }
 0x216   :  { %365 = vsyncpa [#allocation6], 1 }
 0x217   :  { %366 = vsyncpa [#allocation4], 1 }

</bundles_post_ra>
